<compile_context>
chip_gen: v5e
topology: v5e:2x2
jax: 0.10.0
libtpu: 0.0.40
codegen_flags: <defaults>
</compile_context>

<pallas_src>
import functools

import jax
import jax.numpy as jnp
from jax.experimental import pallas as pl
from jax.experimental.pallas import tpu as pltpu

_EPS = 0.01  # guide_filter eps


def _focus_kernel(x_ref, q_ref, max_ref, *, img_w):
    # x_ref / q_ref: (H, d*W) slab for one (channel, batch-tile); max_ref: (1, 1).
    h, dw = x_ref.shape
    d = dw // img_w

    I = x_ref[...].astype(jnp.float32)

    # Broadcastable edge masks, built once and reused by all 6 box-filter calls.
    lane = jax.lax.broadcasted_iota(jnp.int32, (1, dw), 1)
    col0 = lane == 0
    colL = lane == img_w - 1
    for s in range(1, d):                      # per-image segment edges (static unroll)
        col0 = jnp.logical_or(col0, lane == s * img_w)
        colL = jnp.logical_or(colL, lane == s * img_w + img_w - 1)
    row = jax.lax.broadcasted_iota(jnp.int32, (h, 1), 0)
    row0 = row == 0
    rowL = row == h - 1

    def box3(u):
        """Separable 3x3 box mean with per-image replication padding (XLU rolls)."""
        ul = pltpu.roll(u, 1, axis=1)          # ul[:, j] = u[:, j-1]  (wraps; masked)
        ur = pltpu.roll(u, dw - 1, axis=1)     # ur[:, j] = u[:, j+1]
        s_ = jnp.where(col0, u, ul) + u + jnp.where(colL, u, ur)
        su = pltpu.roll(s_, 1, axis=0)         # su[i, :] = s[i-1, :]
        sd = pltpu.roll(s_, h - 1, axis=0)     # sd[i, :] = s[i+1, :]
        t = jnp.where(row0, s_, su) + s_ + jnp.where(rowL, s_, sd)
        return t * (1.0 / 9.0)

    # rfm = |x - box(x)|  (box(I) doubles as the guide-filter mean_I).
    mean_I = box3(I)
    mean_II = box3(I * I)
    p = jnp.abs(I - mean_I)
    mean_p = box3(p)
    mean_Ip = box3(I * p)

    var_I = mean_II - mean_I * mean_I
    cov_Ip = mean_Ip - mean_I * mean_p

    den = var_I + _EPS
    inv = pl.reciprocal(den, approx=True)
    inv = inv * (2.0 - den * inv)              # one Newton step -> ~f32 accuracy
    a = cov_Ip * inv
    b = mean_p - a * mean_I

    q = box3(a) * I + box3(b)                  # afm (un-normalized)

    q_ref[...] = q
    mx = jnp.max(q, axis=1, keepdims=True)     # (H, 1)  lane reduce
    max_ref[...] = jnp.max(mx, axis=0, keepdims=True)   # (1, 1)


def _round_up(v, m):
    return (v + m - 1) // m * m


def _pick_batch_tile(n, w):
    """Smallest divisor d of n with d*w >= 128 lanes; else the whole batch."""
    for d in range(1, n + 1):
        if n % d == 0 and d * w >= 128:
            return d
    return n


@jax.jit
def get_focus_nopadding(x):
    n, c, h, w = x.shape
    d = _pick_batch_tile(n, w)
    nb = n // d
    dw = d * w

    # Lane-dense layout: (N,C,H,W) -> (C, NB, H, d*W)  (batch tile folded into lanes).
    xr = x.reshape(nb, d, c, h, w)
    xr = jnp.transpose(xr, (2, 0, 3, 1, 4)).reshape(c, nb, h, dw)

    # VMEM budget: ~24 live f32 intermediates + double-buffered in/out slabs,
    # padded to (8,128) vreg tiling; clamped to 48 MiB for v7x headroom.
    slab = _round_up(h, 8) * _round_up(dw, 128) * 4
    vmem_limit = int(min(max(32 * 1024 * 1024, 28 * slab), 48 * 1024 * 1024))

    cost = pl.CostEstimate(
        flops=80 * n * c * h * w,
        transcendentals=n * c * h * w,
        bytes_accessed=8 * n * c * h * w,
    )

    q, mx = pl.pallas_call(
        functools.partial(_focus_kernel, img_w=w),
        out_shape=(
            jax.ShapeDtypeStruct((c, nb, h, dw), jnp.float32),
            jax.ShapeDtypeStruct((c, nb, 1, 1), jnp.float32),
        ),
        grid_spec=pltpu.PrefetchScalarGridSpec(
            num_scalar_prefetch=0,
            grid=(c, nb),
            in_specs=[
                pl.BlockSpec((None, None, h, dw), lambda ci, bi: (ci, bi, 0, 0)),
            ],
            out_specs=[
                pl.BlockSpec((None, None, h, dw), lambda ci, bi: (ci, bi, 0, 0)),
                pl.BlockSpec((None, None, 1, 1), lambda ci, bi: (ci, bi, 0, 0)),
            ],
        ),
        compiler_params=pltpu.CompilerParams(
            dimension_semantics=("parallel", "parallel"),
            vmem_limit_bytes=vmem_limit,
        ),
        cost_estimate=cost,
    )(xr)

    # Pass 2: combine per-batch-tile maxes into the per-channel max and normalize
    # (trivial XLA elementwise op, fused with the layout restore below).
    ch_max = jnp.max(mx, axis=1, keepdims=True)          # (C, 1, 1, 1)
    q = (q / ch_max).astype(x.dtype)                     # (C, NB, H, d*W)

    # Restore (N, C, H, W).
    q = q.reshape(c, nb, h, d, w)
    q = jnp.transpose(q, (1, 3, 0, 2, 4)).reshape(n, c, h, w)
    return q


# ---------- pure-JAX reference (for correctness check) ----------
def _box3_ref(x):  # x: (N, C, H, W)
    h, w = x.shape[2], x.shape[3]
    xp = jnp.pad(x, ((0, 0), (0, 0), (1, 1), (1, 1)), mode="edge")
    acc = jnp.zeros_like(x)
    for di in range(3):
        for dj in range(3):
            acc = acc + xp[:, :, di:di + h, dj:dj + w]
    return acc * (1.0 / 9.0)


def _reference(x):
    I = x
    mean_I = _box3_ref(I)
    p = jnp.abs(I - mean_I)
    mean_p = _box3_ref(p)
    mean_II = _box3_ref(I * I)
    mean_Ip = _box3_ref(I * p)
    var_I = mean_II - mean_I * mean_I
    cov_Ip = mean_Ip - mean_I * mean_p
    a = cov_Ip / (var_I + _EPS)
    b = mean_p - a * mean_I
    q = _box3_ref(a) * I + _box3_ref(b)
    mx = jnp.max(q, axis=(0, 2, 3), keepdims=True)  # per-channel global max
    return q / mx


if __name__ == "__main__":
    key = jax.random.PRNGKey(0)
    x = jax.random.uniform(key, (2, 4, 16, 16), dtype=jnp.float32)

    out = get_focus_nopadding(x)
    jax.block_until_ready(out)

    ref = _reference(x)
    assert out.shape == x.shape and out.dtype == x.dtype
    assert jnp.allclose(out, ref, atol=2e-5, rtol=2e-5), "Pallas output mismatch vs reference"

    print("KERNEL_OK")
</pallas_src>

<mosaic_0001>
module attributes {stable_mosaic.version = 11 : i64} {
  func.func @_focus_kernel(%arg0: i32, %arg1: i32, %arg2: memref<1x1x16x32xf32, #tpu.memory_space<vmem>>, %arg3: memref<1x1x16x32xf32, #tpu.memory_space<vmem>>, %arg4: memref<1x1x1x1xf32, #tpu.memory_space<vmem>>) attributes {dimension_semantics = [#tpu.dimension_semantics<parallel>, #tpu.dimension_semantics<parallel>], iteration_bounds = array<i64: 4, 1>, scalar_prefetch = 0 : i64, scratch_operands = 0 : i64, tpu.core_type = #tpu.core_type<tc>, window_params = [{transform_indices = @transform_0, window_bounds = array<i64: 1, 1, 16, 32>}, {transform_indices = @transform_1, window_bounds = array<i64: 1, 1, 16, 32>}, {transform_indices = @transform_2, window_bounds = array<i64: 1, 1, 1, 1>}]} {
    %c0 = arith.constant 0 : index
    %c0_0 = arith.constant 0 : index
    %c0_1 = arith.constant 0 : index
    %c0_2 = arith.constant 0 : index
    %0 = vector.load %arg2[%c0, %c0_0, %c0_1, %c0_2] : memref<1x1x16x32xf32, #tpu.memory_space<vmem>>, vector<1x1x16x32xf32>
    %1 = vector.shape_cast %0 : vector<1x1x16x32xf32> to vector<16x32xf32>
    %2 = tpu.iota {dimensions = array<i32: 1>} : vector<1x32xi32>
    %c0_i32 = arith.constant 0 : i32
    %3 = vector.broadcast %c0_i32 : i32 to vector<1x32xi32>
    %4 = arith.cmpi eq, %2, %3 : vector<1x32xi32>
    %c15_i32 = arith.constant 15 : i32
    %5 = vector.broadcast %c15_i32 : i32 to vector<1x32xi32>
    %6 = arith.cmpi eq, %2, %5 : vector<1x32xi32>
    %c16_i32 = arith.constant 16 : i32
    %7 = vector.broadcast %c16_i32 : i32 to vector<1x32xi32>
    %8 = arith.cmpi eq, %2, %7 : vector<1x32xi32>
    %9 = arith.ori %4, %8 : vector<1x32xi1>
    %c31_i32 = arith.constant 31 : i32
    %10 = vector.broadcast %c31_i32 : i32 to vector<1x32xi32>
    %11 = arith.cmpi eq, %2, %10 : vector<1x32xi32>
    %12 = arith.ori %6, %11 : vector<1x32xi1>
    %13 = tpu.iota {dimensions = array<i32: 0>} : vector<16x1xi32>
    %c0_i32_3 = arith.constant 0 : i32
    %14 = vector.broadcast %c0_i32_3 : i32 to vector<16x1xi32>
    %15 = arith.cmpi eq, %13, %14 : vector<16x1xi32>
    %c15_i32_4 = arith.constant 15 : i32
    %16 = vector.broadcast %c15_i32_4 : i32 to vector<16x1xi32>
    %17 = arith.cmpi eq, %13, %16 : vector<16x1xi32>
    %c1_i32 = arith.constant 1 : i32
    %18 = tpu.dynamic_rotate %1 by %c1_i32 dim 1 : vector<16x32xf32>, i32 -> vector<16x32xf32>
    %c31_i32_5 = arith.constant 31 : i32
    %19 = tpu.dynamic_rotate %1 by %c31_i32_5 dim 1 : vector<16x32xf32>, i32 -> vector<16x32xf32>
    %20 = vector.shape_cast %9 : vector<1x32xi1> to vector<1x32xi1>
    %21 = vector.broadcast %20 : vector<1x32xi1> to vector<16x32xi1>
    %22 = arith.select %21, %1, %18 : vector<16x32xi1>, vector<16x32xf32>
    %23 = arith.addf %22, %1 : vector<16x32xf32>
    %24 = vector.shape_cast %12 : vector<1x32xi1> to vector<1x32xi1>
    %25 = vector.broadcast %24 : vector<1x32xi1> to vector<16x32xi1>
    %26 = arith.select %25, %1, %19 : vector<16x32xi1>, vector<16x32xf32>
    %27 = arith.addf %23, %26 : vector<16x32xf32>
    %c1_i32_6 = arith.constant 1 : i32
    %28 = tpu.dynamic_rotate %27 by %c1_i32_6 dim 0 : vector<16x32xf32>, i32 -> vector<16x32xf32>
    %c15_i32_7 = arith.constant 15 : i32
    %29 = tpu.dynamic_rotate %27 by %c15_i32_7 dim 0 : vector<16x32xf32>, i32 -> vector<16x32xf32>
    %30 = vector.shape_cast %15 : vector<16x1xi1> to vector<16x1xi1>
    %31 = vector.broadcast %30 : vector<16x1xi1> to vector<16x32xi1>
    %32 = arith.select %31, %27, %28 : vector<16x32xi1>, vector<16x32xf32>
    %33 = arith.addf %32, %27 : vector<16x32xf32>
    %34 = vector.shape_cast %17 : vector<16x1xi1> to vector<16x1xi1>
    %35 = vector.broadcast %34 : vector<16x1xi1> to vector<16x32xi1>
    %36 = arith.select %35, %27, %29 : vector<16x32xi1>, vector<16x32xf32>
    %37 = arith.addf %33, %36 : vector<16x32xf32>
    %cst = arith.constant 0.111111112 : f32
    %38 = vector.broadcast %cst : f32 to vector<16x32xf32>
    %39 = arith.mulf %37, %38 : vector<16x32xf32>
    %40 = arith.mulf %1, %1 : vector<16x32xf32>
    %c1_i32_8 = arith.constant 1 : i32
    %41 = tpu.dynamic_rotate %40 by %c1_i32_8 dim 1 : vector<16x32xf32>, i32 -> vector<16x32xf32>
    %c31_i32_9 = arith.constant 31 : i32
    %42 = tpu.dynamic_rotate %40 by %c31_i32_9 dim 1 : vector<16x32xf32>, i32 -> vector<16x32xf32>
    %43 = vector.shape_cast %9 : vector<1x32xi1> to vector<1x32xi1>
    %44 = vector.broadcast %43 : vector<1x32xi1> to vector<16x32xi1>
    %45 = arith.select %44, %40, %41 : vector<16x32xi1>, vector<16x32xf32>
    %46 = arith.addf %45, %40 : vector<16x32xf32>
    %47 = vector.shape_cast %12 : vector<1x32xi1> to vector<1x32xi1>
    %48 = vector.broadcast %47 : vector<1x32xi1> to vector<16x32xi1>
    %49 = arith.select %48, %40, %42 : vector<16x32xi1>, vector<16x32xf32>
    %50 = arith.addf %46, %49 : vector<16x32xf32>
    %c1_i32_10 = arith.constant 1 : i32
    %51 = tpu.dynamic_rotate %50 by %c1_i32_10 dim 0 : vector<16x32xf32>, i32 -> vector<16x32xf32>
    %c15_i32_11 = arith.constant 15 : i32
    %52 = tpu.dynamic_rotate %50 by %c15_i32_11 dim 0 : vector<16x32xf32>, i32 -> vector<16x32xf32>
    %53 = vector.shape_cast %15 : vector<16x1xi1> to vector<16x1xi1>
    %54 = vector.broadcast %53 : vector<16x1xi1> to vector<16x32xi1>
    %55 = arith.select %54, %50, %51 : vector<16x32xi1>, vector<16x32xf32>
    %56 = arith.addf %55, %50 : vector<16x32xf32>
    %57 = vector.shape_cast %17 : vector<16x1xi1> to vector<16x1xi1>
    %58 = vector.broadcast %57 : vector<16x1xi1> to vector<16x32xi1>
    %59 = arith.select %58, %50, %52 : vector<16x32xi1>, vector<16x32xf32>
    %60 = arith.addf %56, %59 : vector<16x32xf32>
    %cst_12 = arith.constant 0.111111112 : f32
    %61 = vector.broadcast %cst_12 : f32 to vector<16x32xf32>
    %62 = arith.mulf %60, %61 : vector<16x32xf32>
    %63 = arith.subf %1, %39 : vector<16x32xf32>
    %64 = math.absf %63 : vector<16x32xf32>
    %c1_i32_13 = arith.constant 1 : i32
    %65 = tpu.dynamic_rotate %64 by %c1_i32_13 dim 1 : vector<16x32xf32>, i32 -> vector<16x32xf32>
    %c31_i32_14 = arith.constant 31 : i32
    %66 = tpu.dynamic_rotate %64 by %c31_i32_14 dim 1 : vector<16x32xf32>, i32 -> vector<16x32xf32>
    %67 = vector.shape_cast %9 : vector<1x32xi1> to vector<1x32xi1>
    %68 = vector.broadcast %67 : vector<1x32xi1> to vector<16x32xi1>
    %69 = arith.select %68, %64, %65 : vector<16x32xi1>, vector<16x32xf32>
    %70 = arith.addf %69, %64 : vector<16x32xf32>
    %71 = vector.shape_cast %12 : vector<1x32xi1> to vector<1x32xi1>
    %72 = vector.broadcast %71 : vector<1x32xi1> to vector<16x32xi1>
    %73 = arith.select %72, %64, %66 : vector<16x32xi1>, vector<16x32xf32>
    %74 = arith.addf %70, %73 : vector<16x32xf32>
    %c1_i32_15 = arith.constant 1 : i32
    %75 = tpu.dynamic_rotate %74 by %c1_i32_15 dim 0 : vector<16x32xf32>, i32 -> vector<16x32xf32>
    %c15_i32_16 = arith.constant 15 : i32
    %76 = tpu.dynamic_rotate %74 by %c15_i32_16 dim 0 : vector<16x32xf32>, i32 -> vector<16x32xf32>
    %77 = vector.shape_cast %15 : vector<16x1xi1> to vector<16x1xi1>
    %78 = vector.broadcast %77 : vector<16x1xi1> to vector<16x32xi1>
    %79 = arith.select %78, %74, %75 : vector<16x32xi1>, vector<16x32xf32>
    %80 = arith.addf %79, %74 : vector<16x32xf32>
    %81 = vector.shape_cast %17 : vector<16x1xi1> to vector<16x1xi1>
    %82 = vector.broadcast %81 : vector<16x1xi1> to vector<16x32xi1>
    %83 = arith.select %82, %74, %76 : vector<16x32xi1>, vector<16x32xf32>
    %84 = arith.addf %80, %83 : vector<16x32xf32>
    %cst_17 = arith.constant 0.111111112 : f32
    %85 = vector.broadcast %cst_17 : f32 to vector<16x32xf32>
    %86 = arith.mulf %84, %85 : vector<16x32xf32>
    %87 = arith.mulf %1, %64 : vector<16x32xf32>
    %c1_i32_18 = arith.constant 1 : i32
    %88 = tpu.dynamic_rotate %87 by %c1_i32_18 dim 1 : vector<16x32xf32>, i32 -> vector<16x32xf32>
    %c31_i32_19 = arith.constant 31 : i32
    %89 = tpu.dynamic_rotate %87 by %c31_i32_19 dim 1 : vector<16x32xf32>, i32 -> vector<16x32xf32>
    %90 = vector.shape_cast %9 : vector<1x32xi1> to vector<1x32xi1>
    %91 = vector.broadcast %90 : vector<1x32xi1> to vector<16x32xi1>
    %92 = arith.select %91, %87, %88 : vector<16x32xi1>, vector<16x32xf32>
    %93 = arith.addf %92, %87 : vector<16x32xf32>
    %94 = vector.shape_cast %12 : vector<1x32xi1> to vector<1x32xi1>
    %95 = vector.broadcast %94 : vector<1x32xi1> to vector<16x32xi1>
    %96 = arith.select %95, %87, %89 : vector<16x32xi1>, vector<16x32xf32>
    %97 = arith.addf %93, %96 : vector<16x32xf32>
    %c1_i32_20 = arith.constant 1 : i32
    %98 = tpu.dynamic_rotate %97 by %c1_i32_20 dim 0 : vector<16x32xf32>, i32 -> vector<16x32xf32>
    %c15_i32_21 = arith.constant 15 : i32
    %99 = tpu.dynamic_rotate %97 by %c15_i32_21 dim 0 : vector<16x32xf32>, i32 -> vector<16x32xf32>
    %100 = vector.shape_cast %15 : vector<16x1xi1> to vector<16x1xi1>
    %101 = vector.broadcast %100 : vector<16x1xi1> to vector<16x32xi1>
    %102 = arith.select %101, %97, %98 : vector<16x32xi1>, vector<16x32xf32>
    %103 = arith.addf %102, %97 : vector<16x32xf32>
    %104 = vector.shape_cast %17 : vector<16x1xi1> to vector<16x1xi1>
    %105 = vector.broadcast %104 : vector<16x1xi1> to vector<16x32xi1>
    %106 = arith.select %105, %97, %99 : vector<16x32xi1>, vector<16x32xf32>
    %107 = arith.addf %103, %106 : vector<16x32xf32>
    %cst_22 = arith.constant 0.111111112 : f32
    %108 = vector.broadcast %cst_22 : f32 to vector<16x32xf32>
    %109 = arith.mulf %107, %108 : vector<16x32xf32>
    %110 = arith.mulf %39, %39 : vector<16x32xf32>
    %111 = arith.subf %62, %110 : vector<16x32xf32>
    %112 = arith.mulf %39, %86 : vector<16x32xf32>
    %113 = arith.subf %109, %112 : vector<16x32xf32>
    %cst_23 = arith.constant 0.00999999977 : f32
    %114 = vector.broadcast %cst_23 : f32 to vector<16x32xf32>
    %115 = arith.addf %111, %114 : vector<16x32xf32>
    %116 = tpu.reciprocal %115 {approx = true} : vector<16x32xf32> -> vector<16x32xf32>
    %117 = arith.mulf %115, %116 : vector<16x32xf32>
    %cst_24 = arith.constant 2.000000e+00 : f32
    %118 = vector.broadcast %cst_24 : f32 to vector<16x32xf32>
    %119 = arith.subf %118, %117 : vector<16x32xf32>
    %120 = arith.mulf %116, %119 : vector<16x32xf32>
    %121 = arith.mulf %113, %120 : vector<16x32xf32>
    %122 = arith.mulf %121, %39 : vector<16x32xf32>
    %123 = arith.subf %86, %122 : vector<16x32xf32>
    %c1_i32_25 = arith.constant 1 : i32
    %124 = tpu.dynamic_rotate %121 by %c1_i32_25 dim 1 : vector<16x32xf32>, i32 -> vector<16x32xf32>
    %c31_i32_26 = arith.constant 31 : i32
    %125 = tpu.dynamic_rotate %121 by %c31_i32_26 dim 1 : vector<16x32xf32>, i32 -> vector<16x32xf32>
    %126 = vector.shape_cast %9 : vector<1x32xi1> to vector<1x32xi1>
    %127 = vector.broadcast %126 : vector<1x32xi1> to vector<16x32xi1>
    %128 = arith.select %127, %121, %124 : vector<16x32xi1>, vector<16x32xf32>
    %129 = arith.addf %128, %121 : vector<16x32xf32>
    %130 = vector.shape_cast %12 : vector<1x32xi1> to vector<1x32xi1>
    %131 = vector.broadcast %130 : vector<1x32xi1> to vector<16x32xi1>
    %132 = arith.select %131, %121, %125 : vector<16x32xi1>, vector<16x32xf32>
    %133 = arith.addf %129, %132 : vector<16x32xf32>
    %c1_i32_27 = arith.constant 1 : i32
    %134 = tpu.dynamic_rotate %133 by %c1_i32_27 dim 0 : vector<16x32xf32>, i32 -> vector<16x32xf32>
    %c15_i32_28 = arith.constant 15 : i32
    %135 = tpu.dynamic_rotate %133 by %c15_i32_28 dim 0 : vector<16x32xf32>, i32 -> vector<16x32xf32>
    %136 = vector.shape_cast %15 : vector<16x1xi1> to vector<16x1xi1>
    %137 = vector.broadcast %136 : vector<16x1xi1> to vector<16x32xi1>
    %138 = arith.select %137, %133, %134 : vector<16x32xi1>, vector<16x32xf32>
    %139 = arith.addf %138, %133 : vector<16x32xf32>
    %140 = vector.shape_cast %17 : vector<16x1xi1> to vector<16x1xi1>
    %141 = vector.broadcast %140 : vector<16x1xi1> to vector<16x32xi1>
    %142 = arith.select %141, %133, %135 : vector<16x32xi1>, vector<16x32xf32>
    %143 = arith.addf %139, %142 : vector<16x32xf32>
    %cst_29 = arith.constant 0.111111112 : f32
    %144 = vector.broadcast %cst_29 : f32 to vector<16x32xf32>
    %145 = arith.mulf %143, %144 : vector<16x32xf32>
    %146 = arith.mulf %145, %1 : vector<16x32xf32>
    %c1_i32_30 = arith.constant 1 : i32
    %147 = tpu.dynamic_rotate %123 by %c1_i32_30 dim 1 : vector<16x32xf32>, i32 -> vector<16x32xf32>
    %c31_i32_31 = arith.constant 31 : i32
    %148 = tpu.dynamic_rotate %123 by %c31_i32_31 dim 1 : vector<16x32xf32>, i32 -> vector<16x32xf32>
    %149 = vector.shape_cast %9 : vector<1x32xi1> to vector<1x32xi1>
    %150 = vector.broadcast %149 : vector<1x32xi1> to vector<16x32xi1>
    %151 = arith.select %150, %123, %147 : vector<16x32xi1>, vector<16x32xf32>
    %152 = arith.addf %151, %123 : vector<16x32xf32>
    %153 = vector.shape_cast %12 : vector<1x32xi1> to vector<1x32xi1>
    %154 = vector.broadcast %153 : vector<1x32xi1> to vector<16x32xi1>
    %155 = arith.select %154, %123, %148 : vector<16x32xi1>, vector<16x32xf32>
    %156 = arith.addf %152, %155 : vector<16x32xf32>
    %c1_i32_32 = arith.constant 1 : i32
    %157 = tpu.dynamic_rotate %156 by %c1_i32_32 dim 0 : vector<16x32xf32>, i32 -> vector<16x32xf32>
    %c15_i32_33 = arith.constant 15 : i32
    %158 = tpu.dynamic_rotate %156 by %c15_i32_33 dim 0 : vector<16x32xf32>, i32 -> vector<16x32xf32>
    %159 = vector.shape_cast %15 : vector<16x1xi1> to vector<16x1xi1>
    %160 = vector.broadcast %159 : vector<16x1xi1> to vector<16x32xi1>
    %161 = arith.select %160, %156, %157 : vector<16x32xi1>, vector<16x32xf32>
    %162 = arith.addf %161, %156 : vector<16x32xf32>
    %163 = vector.shape_cast %17 : vector<16x1xi1> to vector<16x1xi1>
    %164 = vector.broadcast %163 : vector<16x1xi1> to vector<16x32xi1>
    %165 = arith.select %164, %156, %158 : vector<16x32xi1>, vector<16x32xf32>
    %166 = arith.addf %162, %165 : vector<16x32xf32>
    %cst_34 = arith.constant 0.111111112 : f32
    %167 = vector.broadcast %cst_34 : f32 to vector<16x32xf32>
    %168 = arith.mulf %166, %167 : vector<16x32xf32>
    %169 = arith.addf %146, %168 : vector<16x32xf32>
    %c0_35 = arith.constant 0 : index
    %c0_36 = arith.constant 0 : index
    %c0_37 = arith.constant 0 : index
    %c0_38 = arith.constant 0 : index
    %170 = vector.load %arg3[%c0_35, %c0_36, %c0_37, %c0_38] : memref<1x1x16x32xf32, #tpu.memory_space<vmem>>, vector<1x1x16x32xf32>
    %171 = vector.shape_cast %170 : vector<1x1x16x32xf32> to vector<16x32xf32>
    %172 = vector.shape_cast %169 : vector<16x32xf32> to vector<1x1x16x32xf32>
    tpu.vector_store %arg3[%c0_35, %c0_36, %c0_37, %c0_38], %172 {strides = array<i32>} : memref<1x1x16x32xf32, #tpu.memory_space<vmem>>, vector<1x1x16x32xf32>,
    %cst_39 = arith.constant dense<0xFF800000> : vector<16xf32>
    %173 = vector.multi_reduction <maximumf>, %169, %cst_39 [1] : vector<16x32xf32> to vector<16xf32>
    %174 = vector.shape_cast %173 : vector<16xf32> to vector<16x1xf32>
    %cst_40 = arith.constant dense<0xFF800000> : vector<1xf32>
    %175 = vector.multi_reduction <maximumf>, %174, %cst_40 [0] : vector<16x1xf32> to vector<1xf32>
    %176 = vector.shape_cast %175 : vector<1xf32> to vector<1x1xf32>
    %c0_41 = arith.constant 0 : index
    %c0_42 = arith.constant 0 : index
    %c0_43 = arith.constant 0 : index
    %c0_44 = arith.constant 0 : index
    %177 = vector.load %arg4[%c0_41, %c0_42, %c0_43, %c0_44] : memref<1x1x1x1xf32, #tpu.memory_space<vmem>>, vector<1x1x1x1xf32>
    %178 = vector.shape_cast %177 : vector<1x1x1x1xf32> to vector<1x1xf32>
    %179 = vector.shape_cast %176 : vector<1x1xf32> to vector<1x1x1x1xf32>
    tpu.vector_store %arg4[%c0_41, %c0_42, %c0_43, %c0_44], %179 {strides = array<i32>} : memref<1x1x1x1xf32, #tpu.memory_space<vmem>>, vector<1x1x1x1xf32>,
    return
  }
  func.func @transform_0(%arg0: i32, %arg1: i32) -> (i32, i32, i32, i32) {
    %c0_i32 = arith.constant 0 : i32
    %c0_i32_0 = arith.constant 0 : i32
    %c0_i32_1 = arith.constant 0 : i32
    return %arg0, %arg1, %c0_i32, %c0_i32_0 : i32, i32, i32, i32
  }
  func.func @transform_1(%arg0: i32, %arg1: i32) -> (i32, i32, i32, i32) {
    %c0_i32 = arith.constant 0 : i32
    %c0_i32_0 = arith.constant 0 : i32
    %c0_i32_1 = arith.constant 0 : i32
    return %arg0, %arg1, %c0_i32, %c0_i32_0 : i32, i32, i32, i32
  }
  func.func @transform_2(%arg0: i32, %arg1: i32) -> (i32, i32, i32, i32) {
    %c0_i32 = arith.constant 0 : i32
    %c0_i32_0 = arith.constant 0 : i32
    %c0_i32_1 = arith.constant 0 : i32
    return %arg0, %arg1, %c0_i32, %c0_i32_0 : i32, i32, i32, i32
  }
}

</mosaic_0001>

<bundles_post_ra>
// kernel: get_focus_nopadding.1
= control target key start
LH: loop header
LB: loop body
LE: loop exit
PB: predicated region body
PF: predicated region fallthrough
CT: control target
= control target key end

     0   :  { %s808_s9 = smov 0   ;;  %s810_s10 = smov 0   ;;  %s1159_s0 = inlined_call_operand.vmem [shape: f32[4,1,16,32], index: 0, kind: input, shape index: {}]   ;;  %s1160_s1 = inlined_call_operand.vmem [shape: f32[4,1,16,32], index: 1, kind: output, shape index: {0}]   ;;  %s1161_s2 = inlined_call_operand.vmem [shape: f32[4,1,1,1], index: 2, kind: output, shape index: {1}]  }
   0x1   :  { %s812_s11 = smov 0  }
   0x2 LB: > { %s25_s12 = sadd.s32 1, %s784_s10  ;;  %p726_p0 = scmp.ge.s32.totalorder %s788_s11, 1  ;;  %s788_s11 = sphi %s812_s11, %s13_s11   ;;  %s784_s10 = sphi %s810_s10, %s1167_s10   ;;  %s780_s9 = sphi %s808_s9, %s1166_s9  }
   0x3   : > { %p27_p1 = scmp.ge.s32.totalorder %s25_s12, 4  ;;  %p137_p2 = scmp.lt.s32.totalorder %s788_s11, 5 }
   0x5   : > { %s1169_s12 = smov (%p27_p1, %s25_s12), 0  ;;  %p138_p3 = pnand %p726_p0, %p137_p2 }
   0x6   : > { %p173_p4 = scmp.lt.s32.totalorder (!%p138_p3), %s780_s9, 3  ;;  %s790_s17 = smov (!%p138_p3), 32  }
   0x7   : > { %141 = sbr.rel (%p138_p3) target bundleno = 1271 (0x4f7), region = 24  ;;  %s791_s18 = smov (!%p138_p3), 127  }
   0x8   : > { %s792_s19 = smov (!%p138_p3), 97  }
   0xc   : > { %s1171_s9 = smov (!%p173_p4, %s780_s9), 3  ;;  %vm214_vm0 = vcmask 1047808   ;;  %v199_v12 = vlaneseq  ;;  %vm577_vm11 = vcmask 261120   ;;  %vm593_vm12 = vcmask 0  }
   0xd   : > { %s733_s13 = sshll.u32 %s1171_s9, 4  ;;  %s196_s25 = scalar_lea.vmem %s1161_s2, %s1171_s9 }
   0xe   : > { %s181_s16 = scalar_lea.vmem %s1159_s0, %s733_s13  ;;  %v200_v14 = vand.u32 127, %v199_v12  ;;  %v879_v20 = vshrl.u32 %v199_v12, 7  ;;  %s190_s22 = scalar_lea.vmem %s1160_s1, %s733_s13 }
   0xf   : > { %v834_v0 = vld [vmem:[%s181_s16] sm:$0xff]  ;;  %v838_v1 = vld [vmem:[%s181_s16 + $0x8] sm:$0xff] }
  0x10   : > { %215 = vrot.lane.b32.xlu0 %v834_v0, %s790_s17  ;;  %v854_v8 = vmul.f32 %v838_v1, %v838_v1  ;;  %v864_v11 = vmul.f32 %v834_v0, %v834_v0  ;;  %vm201_vm1 = vcmp.eq.s32.totalorder %v200_v14, 0  ;;  %vm203_vm2 = vcmp.eq.s32.totalorder %v200_v14, 16 }
  0x11   : > { %vm202_vm3 = vcmp.eq.s32.totalorder %v200_v14, 15  ;;  %vm205_vm4 = vcmp.eq.s32.totalorder %v200_v14, 31  ;;  %vm868_vm5 = vmor %vm201_vm1, %vm203_vm2  ;;  %v889_v24 = vadd.s32 8, %v879_v20  ;;  %vm210_vm7 = vcmp.eq.s32.totalorder %v879_v20, 0 }
  0x12   : > { %vm872_vm6 = vmor %vm202_vm3, %vm205_vm4  ;;  %vm255_vm9 = vcmp.lt.s32.totalorder %v879_v20, 1  ;;  %vm260_vm10 = vcmp.lt.s32.totalorder %v879_v20, 7 }
  0x13   : > { %vm213_vm8 = vcmp.eq.s32.totalorder %v889_v24, 15 }
  0x18   : > { %218 = vrot.lane.b32.xlu0 %v838_v1, %s790_s17 }
  0x82   : > { %v216_v2 = vpop.permute.xlu0 %215 }
  0x83   : > { %v217_v3 = vsel %vm214_vm0, %v216_v2, %v834_v0 }
  0x84   : > { %221 = vrot.lane.b32.xlu1 %v217_v3, %s790_s17 }
  0x8a   : > { %v219_v4 = vpop.permute.xlu0 %218 }
  0x8b   : > { %v220_v5 = vsel %vm214_vm0, %v219_v4, %v838_v1 }
  0x8c   : > { %223 = vrot.lane.b32.xlu1 %v220_v5, %s790_s17 }
  0xf6   : > { %v222_v6 = vpop.permute.xlu1 %221 }
  0xf7   : > { %v225_v7 = vsel %vm214_vm0, %v222_v6, %v834_v0 }
  0xf8   : > { %243 = vrot.lane.b32.xlu0 %v225_v7, %s791_s18  ;;  %231 = vrot.lane.b32.xlu2 %v225_v7, %s792_s19 }
  0xfe   : > { %v224_v9 = vpop.permute.xlu1 %223 }
  0xff   : > { %v226_v10 = vsel %vm214_vm0, %v224_v9, %v838_v1 }
 0x100   : > { %245 = vrot.lane.b32.xlu1 %v226_v10, %s791_s18  ;;  %233 = vrot.lane.b32.xlu2 %v226_v10, %s792_s19 }
 0x101   : > { %286 = vrot.lane.b32.xlu0 %v854_v8, %s790_s17 }
 0x108   : > { %283 = vrot.lane.b32.xlu2 %v864_v11, %s790_s17 }
 0x152   : > { %v232_v13 = vpop.permute.xlu2 %231 }
 0x153   : > { %v237_v19 = vsel %vm868_vm5, %v834_v0, %v232_v13 }
 0x154   : > { %v239_v23 = vadd.f32 %v237_v19, %v834_v0 }
 0x15a   : > { %v234_v16 = vpop.permute.xlu2 %233 }
 0x15b   : > { %v238_v21 = vsel %vm868_vm5, %v838_v1, %v234_v16 }
 0x15c   : > { %v240_v25 = vadd.f32 %v238_v21, %v838_v1 }
 0x162   : > { %v284_v51 = vpop.permute.xlu2 %283 }
 0x163   : > { %v285_v53 = vsel %vm214_vm0, %v284_v51, %v864_v11 }
 0x16a   : > { %v244_v18 = vpop.permute.xlu0 %243 }
 0x16b   : > { %v249_v22 = vsel %vm872_vm6, %v834_v0, %v244_v18 }
 0x16c   : > { %v251_v26 = vadd.f32 %v249_v22, %v239_v23 }
 0x16e   : > { %v253_v30 = vrot.slane %v251_v26, 7  ;;  %v258_v31 = vrot.slane %v251_v26, 1 }
 0x172   : > { %v246_v27 = vpop.permute.xlu1 %245 }
 0x173   : > { %v250_v28 = vsel %vm872_vm6, %v838_v1, %v246_v27  ;;  %v287_v52 = vpop.permute.xlu0 %286 }
 0x174   : > { %v252_v29 = vadd.f32 %v250_v28, %v240_v25  ;;  %v288_v55 = vsel %vm214_vm0, %v287_v52, %v854_v8 }
 0x176   : > { %v254_v32 = vrot.slane %v252_v29, 7  ;;  %v259_v33 = vrot.slane %v252_v29, 1 }
 0x178   : > { %v256_v34 = vsel %vm255_vm9, %v253_v30, %v254_v32  ;;  %v257_v35 = vsel %vm255_vm9, %v254_v32, %v253_v30  ;;  %v262_v36 = vsel %vm260_vm10, %v259_v33, %v258_v31  ;;  %v261_v41 = vsel %vm260_vm10, %v258_v31, %v259_v33 }
 0x179   : > { %v267_v37 = vsel %vm210_vm7, %v251_v26, %v257_v35  ;;  %v270_v38 = vadd.f32 %v256_v34, %v252_v29  ;;  %v276_v39 = vsel %vm213_vm8, %v252_v29, %v262_v36 }
 0x17a   : > { %v269_v40 = vadd.f32 %v267_v37, %v251_v26 }
 0x17b   : > { %v278_v42 = vadd.f32 %v276_v39, %v270_v38 }
 0x17c   : > { %v277_v43 = vadd.f32 %v269_v40, %v261_v41 }
 0x17d   : > { %v911_v44 = vmul.f32 0.11111111, %v278_v42 }
 0x17e   : > { %v913_v45 = vmul.f32 0.11111111, %v277_v43 }
 0x17f   : > { %v336_v46 = vsub.f32 %v838_v1, %v911_v44 }
 0x180   : > { %v335_v47 = vsub.f32 %v834_v0, %v913_v45 }
 0x181   : > { %v919_v48 = vand.u32 2147483647, %v336_v46 }
 0x182   : > { %v921_v49 = vand.u32 2147483647, %v335_v47 }
 0x183   : > { %342 = vrot.lane.b32.xlu2 %v919_v48, %s790_s17  ;;  %v937_v54 = vmul.f32 %v919_v48, %v838_v1 }
 0x184   : > { %339 = vrot.lane.b32.xlu1 %v921_v49, %s790_s17  ;;  %v929_v50 = vmul.f32 %v921_v49, %v834_v0 }
 0x186   : > { %393 = vrot.lane.b32.xlu0 %v929_v50, %s790_s17 }
 0x18b   : > { %289 = vrot.lane.b32.xlu2 %v285_v53, %s790_s17  ;;  %v446_v53 = vmul.f32 %v911_v44, %v911_v44 }
 0x18c   : > { %396 = vrot.lane.b32.xlu1 %v937_v54, %s790_s17 }
 0x18e   : > { %291 = vrot.lane.b32.xlu0 %v288_v55, %s790_s17 }
 0x1dd   : > { %v343_v56 = vpop.permute.xlu2 %342 }
 0x1de   : > { %v344_v57 = vsel %vm214_vm0, %v343_v56, %v919_v48 }
 0x1df   : > { %347 = vrot.lane.b32.xlu2 %v344_v57, %s790_s17  ;;  %v445_v57 = vmul.f32 %v913_v45, %v913_v45 }
 0x1e5   : > { %v290_v58 = vpop.permute.xlu2 %289 }
 0x1e6   : > { %v293_v59 = vsel %vm214_vm0, %v290_v58, %v864_v11 }
 0x1e7   : > { %297 = vrot.lane.b32.xlu2 %v293_v59, %s792_s19 }
 0x1f6   : > { %v340_v60 = vpop.permute.xlu1 %339 }
 0x1f7   : > { %v341_v61 = vsel %vm214_vm0, %v340_v60, %v921_v49 }
 0x1f8   : > { %345 = vrot.lane.b32.xlu1 %v341_v61, %s790_s17  ;;  %v394_v62 = vpop.permute.xlu0 %393 }
 0x1f9   : > { %v395_v63 = vsel %vm214_vm0, %v394_v62, %v929_v50 }
 0x1fa   : > { %399 = vrot.lane.b32.xlu0 %v395_v63, %s790_s17 }
 0x1fe   : > { %v397_v2 = vpop.permute.xlu1 %396 }
 0x1ff   : > { %v398_v3 = vsel %vm214_vm0, %v397_v2, %v937_v54 }
 0x200   : > { %401 = vrot.lane.b32.xlu1 %v398_v3, %s790_s17  ;;  %v292_v4 = vpop.permute.xlu0 %291 }
 0x201   : > { %v294_v5 = vsel %vm214_vm0, %v292_v4, %v854_v8 }
 0x202   : > { %299 = vrot.lane.b32.xlu0 %v294_v5, %s792_s19  ;;  %309 = vrot.lane.b32.xlu2 %v294_v5, %s791_s18 }
 0x208   : > { %307 = vrot.lane.b32.xlu1 %v293_v59, %s791_s18 }
 0x239   : > { %v348_v6 = vpop.permute.xlu2 %347 }
 0x23a   : > { %v350_v7 = vsel %vm214_vm0, %v348_v6, %v919_v48 }
 0x23b   : > { %365 = vrot.lane.b32.xlu0 %v350_v7, %s791_s18  ;;  %355 = vrot.lane.b32.xlu1 %v350_v7, %s792_s19 }
 0x241   : > { %v298_v18 = vpop.permute.xlu2 %297 }
 0x242   : > { %v303_v21 = vsel %vm868_vm5, %v864_v11, %v298_v18 }
 0x243   : > { %v305_v26 = vadd.f32 %v303_v21, %v864_v11 }
 0x25c   : > { %v310_v25 = vpop.permute.xlu2 %309 }
 0x25d   : > { %v314_v29 = vsel %vm872_vm6, %v854_v8, %v310_v25 }
 0x26a   : > { %v346_v9 = vpop.permute.xlu1 %345 }
 0x26b   : > { %v349_v10 = vsel %vm214_vm0, %v346_v9, %v921_v49 }
 0x26c   : > { %v400_v12 = vpop.permute.xlu0 %399  ;;  %363 = vrot.lane.b32.xlu2 %v349_v10, %s791_s18  ;;  %353 = vrot.lane.b32.xlu0 %v349_v10, %s792_s19 }
 0x26d   : > { %v403_v13 = vsel %vm214_vm0, %v400_v12, %v929_v50 }
 0x26e   : > { %407 = vrot.lane.b32.xlu1 %v403_v13, %s792_s19 }
 0x272   : > { %v402_v14 = vpop.permute.xlu1 %401 }
 0x273   : > { %v404_v16 = vsel %vm214_vm0, %v402_v14, %v937_v54 }
 0x274   : > { %409 = vrot.lane.b32.xlu2 %v404_v16, %s792_s19  ;;  %417 = vrot.lane.b32.xlu0 %v403_v13, %s791_s18  ;;  %v300_v19 = vpop.permute.xlu0 %299 }
 0x275   : > { %v304_v22 = vsel %vm868_vm5, %v854_v8, %v300_v19 }
 0x276   : > { %419 = vrot.lane.b32.xlu1 %v404_v16, %s791_s18  ;;  %v306_v27 = vadd.f32 %v304_v22, %v854_v8 }
 0x278   : > { %v316_v31 = vadd.f32 %v314_v29, %v306_v27 }
 0x27a   : > { %v308_v23 = vpop.permute.xlu1 %307  ;;  %v318_v33 = vrot.slane %v316_v31, 7  ;;  %v322_v35 = vrot.slane %v316_v31, 1 }
 0x27b   : > { %v313_v28 = vsel %vm872_vm6, %v864_v11, %v308_v23 }
 0x27c   : > { %v315_v30 = vadd.f32 %v313_v28, %v305_v26 }
 0x27e   : > { %v317_v32 = vrot.slane %v315_v30, 7  ;;  %v321_v34 = vrot.slane %v315_v30, 1 }
 0x280   : > { %v320_v36 = vsel %vm255_vm9, %v318_v33, %v317_v32  ;;  %v319_v37 = vsel %vm255_vm9, %v317_v32, %v318_v33  ;;  %v324_v38 = vsel %vm260_vm10, %v322_v35, %v321_v34  ;;  %v323_v41 = vsel %vm260_vm10, %v321_v34, %v322_v35 }
 0x281   : > { %v325_v11 = vsel %vm210_vm7, %v315_v30, %v320_v36  ;;  %v328_v39 = vadd.f32 %v319_v37, %v316_v31  ;;  %v330_v8 = vsel %vm213_vm8, %v316_v31, %v324_v38 }
 0x282   : > { %v327_v40 = vadd.f32 %v325_v11, %v315_v30 }
 0x283   : > { %v332_v42 = vadd.f32 %v330_v8, %v328_v39 }
 0x284   : > { %v331_v43 = vadd.f32 %v327_v40, %v323_v41 }
 0x285   : > { %v334_v51 = vmul.f32 0.11111111, %v332_v42 }
 0x286   : > { %v333_v55 = vmul.f32 0.11111111, %v331_v43 }
 0x287   : > { %v448_v58 = vsub.f32 %v334_v51, %v446_v53 }
 0x288   : > { %v447_v60 = vsub.f32 %v333_v55, %v445_v57 }
 0x289   : > { %v454_v62 = vadd.f32 0.01, %v448_v58 }
 0x28a   : > { %v453_v6 = vadd.f32 0.01, %v447_v60 }
 0x28b   : > { %762 = vrcp.f32 %v454_v62 }
 0x28c   : > { %764 = vrcp.f32 %v453_v6 }
 0x291   : > { %v763_v33 = vpop.eup %762 }
 0x292   : > { %v765_v36 = vpop.eup %764  ;;  %v458_v40 = vmul.f32 %v763_v33, %v454_v62 }
 0x293   : > { %v457_v42 = vmul.f32 %v765_v36, %v453_v6 }
 0x294   : > { %v460_v57 = vsub.f32 2.0, %v458_v40 }
 0x295   : > { %v459_v60 = vsub.f32 2.0, %v457_v42 }
 0x2ad   : > { %v366_v46 = vpop.permute.xlu0 %365  ;;  %v356_v47 = vpop.permute.xlu1 %355 }
 0x2ae   : > { %v360_v56 = vsel %vm868_vm5, %v919_v48, %v356_v47  ;;  %v370_v63 = vsel %vm872_vm6, %v919_v48, %v366_v46 }
 0x2af   : > { %v362_v59 = vadd.f32 %v360_v56, %v919_v48 }
 0x2b1   : > { %v372_v3 = vadd.f32 %v370_v63, %v362_v59 }
 0x2b3   : > { %v374_v12 = vrot.slane %v372_v3, 7  ;;  %v378_v13 = vrot.slane %v372_v3, 1 }
 0x2c6   : > { %v364_v52 = vpop.permute.xlu2 %363 }
 0x2c7   : > { %v369_v7 = vsel %vm872_vm6, %v921_v49, %v364_v52 }
 0x2ce   : > { %v410_v9 = vpop.permute.xlu2 %409 }
 0x2cf   : > { %v414_v18 = vsel %vm868_vm5, %v937_v54, %v410_v9 }
 0x2d0   : > { %v416_v28 = vadd.f32 %v414_v18, %v937_v54 }
 0x2de   : > { %v354_v61 = vpop.permute.xlu0 %353 }
 0x2df   : > { %v359_v2 = vsel %vm868_vm5, %v921_v49, %v354_v61 }
 0x2e0   : > { %v361_v4 = vadd.f32 %v359_v2, %v921_v49  ;;  %v408_v5 = vpop.permute.xlu1 %407 }
 0x2e1   : > { %v413_v48 = vsel %vm868_vm5, %v929_v50, %v408_v5  ;;  %v462_v5 = vmul.f32 %v763_v33, %v460_v57 }
 0x2e2   : > { %v371_v10 = vadd.f32 %v369_v7, %v361_v4  ;;  %v415_v22 = vadd.f32 %v413_v48, %v929_v50  ;;  %v461_v7 = vmul.f32 %v765_v36, %v459_v60 }
 0x2e4   : > { %v373_v14 = vrot.slane %v371_v10, 7  ;;  %v377_v16 = vrot.slane %v371_v10, 1 }
 0x2e6   : > { %v375_v19 = vsel %vm255_vm9, %v373_v14, %v374_v12  ;;  %v376_v49 = vsel %vm255_vm9, %v374_v12, %v373_v14  ;;  %v380_v21 = vsel %vm260_vm10, %v378_v13, %v377_v16  ;;  %v418_v23 = vpop.permute.xlu0 %417  ;;  %v379_v37 = vsel %vm260_vm10, %v377_v16, %v378_v13 }
 0x2e7   : > { %v381_v25 = vsel %vm210_vm7, %v371_v10, %v376_v49  ;;  %v384_v26 = vadd.f32 %v375_v19, %v372_v3  ;;  %v423_v27 = vsel %vm872_vm6, %v929_v50, %v418_v23  ;;  %v386_v30 = vsel %vm213_vm8, %v372_v3, %v380_v21 }
 0x2e8   : > { %v383_v29 = vadd.f32 %v381_v25, %v371_v10  ;;  %v425_v31 = vadd.f32 %v423_v27, %v415_v22  ;;  %v420_v32 = vpop.permute.xlu1 %419 }
 0x2e9   : > { %v424_v34 = vsel %vm872_vm6, %v937_v54, %v420_v32  ;;  %v388_v38 = vadd.f32 %v386_v30, %v384_v26 }
 0x2ea   : > { %v426_v35 = vadd.f32 %v424_v34, %v416_v28  ;;  %v387_v50 = vadd.f32 %v383_v29, %v379_v37  ;;  %v427_v11 = vrot.slane %v425_v31, 7  ;;  %v431_v41 = vrot.slane %v425_v31, 1 }
 0x2eb   : > { %v390_v54 = vmul.f32 0.11111111, %v388_v38 }
 0x2ec   : > { %v428_v39 = vrot.slane %v426_v35, 7  ;;  %v432_v8 = vrot.slane %v426_v35, 1  ;;  %v389_v53 = vmul.f32 0.11111111, %v387_v50 }
 0x2ed   : > { %v450_v63 = vmul.f32 %v390_v54, %v911_v44 }
 0x2ee   : > { %v429_v43 = vsel %vm255_vm9, %v427_v11, %v428_v39  ;;  %v430_v46 = vsel %vm255_vm9, %v428_v39, %v427_v11  ;;  %v434_v47 = vsel %vm260_vm10, %v432_v8, %v431_v41  ;;  %v433_v58 = vsel %vm260_vm10, %v431_v41, %v432_v8 }
 0x2ef   : > { %v435_v51 = vsel %vm210_vm7, %v425_v31, %v430_v46  ;;  %v438_v52 = vadd.f32 %v429_v43, %v426_v35  ;;  %v440_v56 = vsel %vm213_vm8, %v426_v35, %v434_v47  ;;  %v449_v2 = vmul.f32 %v389_v53, %v913_v45 }
 0x2f0   : > { %v437_v55 = vadd.f32 %v435_v51, %v425_v31 }
 0x2f1   : > { %v442_v59 = vadd.f32 %v440_v56, %v438_v52 }
 0x2f2   : > { %v441_v61 = vadd.f32 %v437_v55, %v433_v58 }
 0x2f3   : > { %v444_v62 = vmul.f32 0.11111111, %v442_v59 }
 0x2f4   : > { %v443_v3 = vmul.f32 0.11111111, %v441_v61 }
 0x2f5   : > { %v452_v4 = vsub.f32 %v444_v62, %v450_v63 }
 0x2f6   : > { %v451_v6 = vsub.f32 %v443_v3, %v449_v2 }
 0x2f7   : > { %v464_v9 = vmul.f32 %v462_v5, %v452_v4 }
 0x2f8   : > { %v463_v10 = vmul.f32 %v461_v7, %v451_v6 }
 0x2f9   : > { %472 = vrot.lane.b32.xlu0 %v464_v9, %s790_s17  ;;  %v466_v13 = vmul.f32 %v464_v9, %v911_v44 }
 0x2fa   : > { %469 = vrot.lane.b32.xlu2 %v463_v10, %s790_s17  ;;  %v465_v48 = vmul.f32 %v463_v10, %v913_v45 }
 0x2fb   : > { %v468_v14 = vsub.f32 %v390_v54, %v466_v13 }
 0x2fc   : > { %v1068_v12 = vsub.f32 %v389_v53, %v465_v48 }
 0x2fe   : > { %523 = vrot.lane.b32.xlu1 %v1068_v12, %s790_s17 }
 0x302   : > { %526 = vrot.lane.b32.xlu2 %v468_v14, %s790_s17 }
 0x354   : > { %v470_v16 = vpop.permute.xlu2 %469 }
 0x355   : > { %v471_v18 = vsel %vm214_vm0, %v470_v16, %v463_v10 }
 0x356   : > { %475 = vrot.lane.b32.xlu0 %v471_v18, %s790_s17 }
 0x35c   : > { %v527_v19 = vpop.permute.xlu2 %526 }
 0x35d   : > { %v528_v49 = vsel %vm214_vm0, %v527_v19, %v468_v14 }
 0x35e   : > { %531 = vrot.lane.b32.xlu0 %v528_v49, %s790_s17 }
 0x36b   : > { %v473_v45 = vpop.permute.xlu0 %472 }
 0x36c   : > { %v474_v21 = vsel %vm214_vm0, %v473_v45, %v464_v9 }
 0x36d   : > { %477 = vrot.lane.b32.xlu1 %v474_v21, %s790_s17 }
 0x370   : > { %v524_v44 = vpop.permute.xlu1 %523 }
 0x371   : > { %v525_v22 = vsel %vm214_vm0, %v524_v44, %v1068_v12 }
 0x372   : > { %529 = vrot.lane.b32.xlu2 %v525_v22, %s790_s17 }
 0x3c8   : > { %v476_v23 = vpop.permute.xlu0 %475 }
 0x3c9   : > { %v479_v25 = vsel %vm214_vm0, %v476_v23, %v463_v10 }
 0x3ca   : > { %493 = vrot.lane.b32.xlu0 %v479_v25, %s791_s18 }
 0x3cc   : > { %v530_v30 = vpop.permute.xlu2 %529 }
 0x3cd   : > { %v533_v31 = vsel %vm214_vm0, %v530_v30, %v1068_v12 }
 0x3d0   : > { %v532_v26 = vpop.permute.xlu0 %531 }
 0x3d1   : > { %v534_v27 = vsel %vm214_vm0, %v532_v26, %v468_v14 }
 0x3d2   : > { %539 = vrot.lane.b32.xlu0 %v534_v27, %s792_s19 }
 0x3df   : > { %v478_v28 = vpop.permute.xlu1 %477 }
 0x3e0   : > { %v480_v29 = vsel %vm214_vm0, %v478_v28, %v464_v9 }
 0x3e1   : > { %495 = vrot.lane.b32.xlu1 %v480_v29, %s791_s18  ;;  %485 = vrot.lane.b32.xlu2 %v480_v29, %s792_s19 }
 0x3e9   : > { %483 = vrot.lane.b32.xlu1 %v479_v25, %s792_s19  ;;  %537 = vrot.lane.b32.xlu2 %v533_v31, %s792_s19 }
 0x3f1   : > { %547 = vrot.lane.b32.xlu1 %v533_v31, %s791_s18  ;;  %549 = vrot.lane.b32.xlu2 %v534_v27, %s791_s18 }
 0x43b   : > { %v486_v32 = vpop.permute.xlu2 %485 }
 0x43c   : > { %v494_v33 = vpop.permute.xlu0 %493  ;;  %v490_v36 = vsel %vm868_vm5, %v464_v9, %v486_v32 }
 0x43d   : > { %v492_v50 = vadd.f32 %v490_v36, %v464_v9  ;;  %v499_v43 = vsel %vm872_vm6, %v463_v10, %v494_v33 }
 0x443   : > { %v538_v34 = vpop.permute.xlu2 %537 }
 0x444   : > { %v540_v37 = vpop.permute.xlu0 %539  ;;  %v543_v47 = vsel %vm868_vm5, %v1068_v12, %v538_v34 }
 0x445   : > { %v544_v40 = vsel %vm868_vm5, %v468_v14, %v540_v37  ;;  %v545_v58 = vadd.f32 %v543_v47, %v1068_v12 }
 0x446   : > { %v546_v51 = vadd.f32 %v544_v40, %v468_v14 }
 0x44b   : > { %v550_v39 = vpop.permute.xlu2 %549 }
 0x44c   : > { %v554_v46 = vsel %vm872_vm6, %v468_v14, %v550_v39 }
 0x44d   : > { %v556_v57 = vadd.f32 %v554_v46, %v546_v51 }
 0x44f   : > { %v558_v6 = vrot.slane %v556_v57, 7 }
 0x453   : > { %v496_v35 = vpop.permute.xlu1 %495 }
 0x454   : > { %v500_v38 = vsel %vm872_vm6, %v464_v9, %v496_v35  ;;  %v562_v9 = vrot.slane %v556_v57, 1 }
 0x455   : > { %v502_v41 = vadd.f32 %v500_v38, %v492_v50 }
 0x457   : > { %v504_v52 = vrot.slane %v502_v41, 7  ;;  %v508_v53 = vrot.slane %v502_v41, 1 }
 0x45b   : > { %v484_v11 = vpop.permute.xlu1 %483 }
 0x45c   : > { %v489_v8 = vsel %vm868_vm5, %v463_v10, %v484_v11 }
 0x45d   : > { %v491_v42 = vadd.f32 %v489_v8, %v463_v10 }
 0x45f   : > { %v501_v54 = vadd.f32 %v499_v43, %v491_v42 }
 0x461   : > { %v503_v55 = vrot.slane %v501_v54, 7  ;;  %v507_v56 = vrot.slane %v501_v54, 1 }
 0x463   : > { %v548_v59 = vpop.permute.xlu1 %547  ;;  %v505_v60 = vsel %vm255_vm9, %v503_v55, %v504_v52  ;;  %v510_v61 = vsel %vm260_vm10, %v508_v53, %v507_v56  ;;  %v506_v62 = vsel %vm255_vm9, %v504_v52, %v503_v55  ;;  %v509_v13 = vsel %vm260_vm10, %v507_v56, %v508_v53 }
 0x464   : > { %v553_v15 = vsel %vm872_vm6, %v1068_v12, %v548_v59  ;;  %v514_v63 = vadd.f32 %v505_v60, %v502_v41  ;;  %v516_v2 = vsel %vm213_vm8, %v502_v41, %v510_v61  ;;  %v511_v3 = vsel %vm210_vm7, %v501_v54, %v506_v62 }
 0x465   : > { %v555_v4 = vadd.f32 %v553_v15, %v545_v58  ;;  %v513_v5 = vadd.f32 %v511_v3, %v501_v54 }
 0x466   : > { %v518_v7 = vadd.f32 %v516_v2, %v514_v63 }
 0x467   : > { %v557_v10 = vrot.slane %v555_v4, 7  ;;  %v561_v48 = vrot.slane %v555_v4, 1  ;;  %v517_v17 = vadd.f32 %v513_v5, %v509_v13 }
 0x468   : > { %v520_v18 = vmul.f32 0.11111111, %v518_v7 }
 0x469   : > { %v559_v12 = vsel %vm255_vm9, %v557_v10, %v558_v6  ;;  %v564_v14 = vsel %vm260_vm10, %v562_v9, %v561_v48  ;;  %v560_v16 = vsel %vm255_vm9, %v558_v6, %v557_v10  ;;  %v519_v44 = vmul.f32 0.11111111, %v517_v17 }
 0x46a   : > { %v568_v19 = vadd.f32 %v559_v12, %v556_v57  ;;  %v570_v49 = vsel %vm213_vm8, %v556_v57, %v564_v14  ;;  %v565_v45 = vsel %vm210_vm7, %v555_v4, %v560_v16  ;;  %v563_v23 = vsel %vm260_vm10, %v561_v48, %v562_v9 }
 0x46b   : > { %v567_v22 = vadd.f32 %v565_v45, %v555_v4  ;;  %v522_v25 = vmul.f32 %v520_v18, %v838_v1  ;;  %v521_v28 = vmul.f32 %v519_v44, %v834_v0 }
 0x46c   : > { %v572_v21 = vadd.f32 %v570_v49, %v568_v19 }
 0x46d   : > { %v571_v27 = vadd.f32 %v567_v22, %v563_v23 }
 0x46e   : > { %v574_v26 = vmul.f32 0.11111111, %v572_v21 }
 0x46f   : > { %v573_v29 = vmul.f32 0.11111111, %v571_v27 }
 0x470   : > { %v576_v24 = vadd.f32 %v574_v26, %v522_v25 }
 0x471   : > { %v575_v31 = vadd.f32 %v573_v29, %v521_v28 }
 0x472   : > { %v583_v30 = vsel %vm577_vm11, %v576_v24, -inf  ;;  %579 = vst.msk [vmem:[%s190_s22 + $0x8] sm:$0xff] %vm577_vm11, %v576_v24 }
 0x473   : > { %584 = vmax.xlane.f32.xlu1 %v583_v30  ;;  %v580_v20 = vsel %vm577_vm11, %v575_v31, -inf  ;;  %578 = vst.msk [vmem:[%s190_s22] sm:$0xff] %vm577_vm11, %v575_v31 }
 0x474   : > { %581 = vmax.xlane.f32.xlu0 %v580_v20 }
 0x4e6   : > { %v585_v1 = vpop.xlane.xlu1 %584 }
 0x4e7   : > { %v582_v32 = vpop.xlane.xlu0 %581 }
 0x4e8   : > { %v586_v33 = vmax.f32 %v582_v32, %v585_v1 }
 0x4ea   : > { %v587_v34 = vrot.slane %v586_v33, 4 }
 0x4ec   : > { %v588_v35 = vmax.f32 %v586_v33, %v587_v34 }
 0x4ee   : > { %v589_v36 = vrot.slane %v588_v35, 2 }
 0x4f0   : > { %v590_v37 = vmax.f32 %v588_v35, %v589_v36 }
 0x4f2   : > { %v591_v38 = vrot.slane %v590_v37, 1 }
 0x4f4   : > { %v592_v0 = vmax.f32 %v590_v37, %v591_v38 }
 0x4f6   : > { %594 = vst.msk [vmem:[%s196_s25] sm:$0x1] %vm593_vm12, %v592_v0 }
 0x4f7 PF: > { %s13_s11 = sadd.s32 1, %s788_s11   ;;  %s1166_s9 = smov %s784_s10 }
 0x4f8   : > { %p10_p5 = scmp.ge.s32.totalorder %s13_s11, 6   ;;  %s1167_s10 = smov %s1169_s12 }
 0x4fa   :  { %12 = sbr.rel (!%p10_p5) target bundleno = 2 (0x2), region = 66 }

</bundles_post_ra>
